<compile_context>
chip_gen: v7x
topology: tpu7x:2x2x1
jax: 0.10.0
libtpu: 0.0.40
codegen_flags: <defaults>
</compile_context>

<pallas_src>
import jax
import jax.numpy as jnp
from jax.experimental import pallas as pl
from jax.experimental.pallas import tpu as pltpu


# ----------------------------------------------------------------------------
# Helpers
# ----------------------------------------------------------------------------
def _round_up(x, n):
    return ((x + n - 1) // n) * n


def _sublane_multiple(dtype):
    # (8, 128) tiling is for 32-bit dtypes; sub-32-bit dtypes pack along sublanes.
    return {4: 8, 2: 16, 1: 32}.get(jnp.dtype(dtype).itemsize, 8)


def _fit_tile(dim, gran, max_tile):
    """Return (padded_dim, tile): tile divides padded_dim, both multiples of gran.

    Pads at `gran` granularity whenever a reasonably large dividing tile exists,
    so worst-case zero padding is < gran elements rather than < max_tile.
    """
    tight = _round_up(dim, gran)
    if tight <= max_tile:
        return tight, tight  # single block
    # Largest divisor of the tightly-padded dim that is a multiple of gran.
    tile = gran
    t = (max_tile // gran) * gran
    while t >= gran:
        if tight % t == 0:
            tile = t
            break
        t -= gran
    round_pad = _round_up(dim, max_tile)
    # Accept the tight option unless its tile is tiny AND rounding up to
    # max_tile only adds <= 12.5% extra padding.
    if tile >= min(max_tile, 128) or round_pad * 8 > tight * 9:
        return tight, tile
    return round_pad, max_tile


# ----------------------------------------------------------------------------
# Small-shape fast path: one un-gridded kernel, full arrays resident in VMEM.
# ----------------------------------------------------------------------------
_SMALL_ELEMS = 256 * 1024   # per-operand element budget for the un-gridded path
_TINY_K = 8                 # contractions this narrow stay on the VPU


def _small_linear_kernel(x_ref, wt_ref, b_ref, o_ref):
    # Full-array refs in VMEM: x (M, K), wt (K, N), b (1, N), o (M, N).
    x = x_ref[...].astype(jnp.float32)
    wt = wt_ref[...].astype(jnp.float32)
    m, k = x.shape
    n = wt.shape[1]
    acc = jnp.broadcast_to(b_ref[...].astype(jnp.float32), (m, n))
    if k <= _TINY_K:
        # Tiny contraction: unrolled VPU multiply-adds, no MXU and no padding.
        for kk in range(k):
            acc = acc + x[:, kk:kk + 1] * wt[kk:kk + 1, :]
    else:
        acc = acc + jnp.dot(x, wt, preferred_element_type=jnp.float32)
    o_ref[...] = acc.astype(o_ref.dtype)


def _linear_small(x2d, wt, b2d, out_dtype):
    m = x2d.shape[0]
    n = wt.shape[1]
    return pl.pallas_call(
        _small_linear_kernel,
        out_shape=jax.ShapeDtypeStruct((m, n), out_dtype),
        in_specs=[pl.BlockSpec(memory_space=pltpu.MemorySpace.VMEM)] * 3,
        out_specs=pl.BlockSpec(memory_space=pltpu.MemorySpace.VMEM),
    )(x2d, wt, b2d)


# ----------------------------------------------------------------------------
# General tiled path (large shapes): M/N/K grid, MXU matmul, K innermost.
# ----------------------------------------------------------------------------
def _tiled_kernel_f32(x_ref, wt_ref, b_ref, o_ref):
    # x (tm, tk) @ wt (tk, tn), accumulated directly into the resident f32 o_ref.
    kk = pl.program_id(2)

    @pl.when(kk == 0)
    def _():
        o_ref[...] = jnp.broadcast_to(b_ref[...].astype(o_ref.dtype), o_ref.shape)

    o_ref[...] += jnp.dot(x_ref[...], wt_ref[...], preferred_element_type=jnp.float32)


def _tiled_kernel_acc(x_ref, wt_ref, b_ref, o_ref, acc_ref):
    # Same, but with an f32 scratch accumulator for narrower output dtypes.
    kk = pl.program_id(2)

    @pl.when(kk == 0)
    def _():
        acc_ref[...] = jnp.broadcast_to(b_ref[...].astype(jnp.float32), acc_ref.shape)

    acc_ref[...] += jnp.dot(x_ref[...], wt_ref[...], preferred_element_type=jnp.float32)

    @pl.when(kk == pl.num_programs(2) - 1)
    def _():
        o_ref[...] = acc_ref[...].astype(o_ref.dtype)


def _linear_tiled(x2d, wt, b2d, out_dtype):
    m, k = x2d.shape
    n = wt.shape[1]

    # Tile caps: double-buffered x / wt / out tiles stay ~7 MiB, which fits the
    # scoped-VMEM defaults on v5e (16 MiB), v6e (32 MiB) and v7x (32 MiB).
    m_pad, tm = _fit_tile(m, _sublane_multiple(x2d.dtype), 256)
    k_pad, tk = _fit_tile(k, 128, 1024)
    n_pad, tn = _fit_tile(n, 128, 512)

    # Zero-pad to full tiles (K padding contributes zeros to the accumulation).
    if (m_pad, k_pad) != (m, k):
        x2d = jnp.pad(x2d, ((0, m_pad - m), (0, k_pad - k)))
    if (k_pad, n_pad) != (k, n):
        wt = jnp.pad(wt, ((0, k_pad - k), (0, n_pad - n)))
    if n_pad != n:
        b2d = jnp.pad(b2d, ((0, 0), (0, n_pad - n)))

    use_f32_out = jnp.dtype(out_dtype) == jnp.dtype(jnp.float32)
    kernel = _tiled_kernel_f32 if use_f32_out else _tiled_kernel_acc
    scratch = [] if use_f32_out else [pltpu.VMEM((tm, tn), jnp.float32)]

    out = pl.pallas_call(
        kernel,
        out_shape=jax.ShapeDtypeStruct((m_pad, n_pad), out_dtype),
        grid=(m_pad // tm, n_pad // tn, k_pad // tk),
        in_specs=[
            pl.BlockSpec((tm, tk), lambda i, j, kk: (i, kk)),   # x tile
            pl.BlockSpec((tk, tn), lambda i, j, kk: (kk, j)),   # weight.T tile (K, N)
            pl.BlockSpec((1, tn), lambda i, j, kk: (0, j)),     # bias tile
        ],
        out_specs=pl.BlockSpec((tm, tn), lambda i, j, kk: (i, j)),
        scratch_shapes=scratch,
        compiler_params=pltpu.CompilerParams(
            dimension_semantics=("parallel", "parallel", "arbitrary"),
        ),
    )(x2d, wt, b2d)

    if (m_pad, n_pad) != (m, n):
        out = out[:m, :n]
    return out


# ----------------------------------------------------------------------------
# Public wrapper
# ----------------------------------------------------------------------------
def linear_pallas(x, wt, bias2d):
    """y = x @ wt + bias, where wt is the pre-transposed (K, N) weight."""
    orig_shape = x.shape
    k = orig_shape[-1]
    n = wt.shape[1]
    m = 1
    for d in orig_shape[:-1]:
        m *= d
    x2d = x.reshape(m, k)

    small = (m * k <= _SMALL_ELEMS and k * n <= _SMALL_ELEMS
             and m * n <= _SMALL_ELEMS)
    if small:
        out = _linear_small(x2d, wt, bias2d, x.dtype)
    else:
        out = _linear_tiled(x2d, wt, bias2d, x.dtype)
    return out.reshape(*orig_shape[:-1], n)


class ModelPallas:
    """JAX/Pallas port of the PyTorch Model (nn.Linear(2, 2))."""

    def __init__(self, key):
        kw, kb = jax.random.split(key)
        in_features, out_features = 2, 2
        # Deterministic init mimicking nn.Linear's uniform(-1/sqrt(in), 1/sqrt(in)).
        bound = 1.0 / (in_features ** 0.5)
        self.weight = jax.random.uniform(
            kw, (out_features, in_features), jnp.float32, -bound, bound)
        self.bias = jax.random.uniform(
            kb, (out_features,), jnp.float32, -bound, bound)
        # Static parameter prep hoisted out of the per-call path:
        self.wt = jnp.transpose(self.weight)            # (K, N), one-time
        self.bias2d = self.bias.reshape(1, out_features)  # (1, N), one-time

    def __call__(self, x1):
        # Forward = F.linear(x1, W, b); all other PyTorch intermediates are dead.
        return linear_pallas(x1, self.wt, self.bias2d)


if __name__ == "__main__":
    key = jax.random.PRNGKey(0)
    k_param, k_x = jax.random.split(key)

    model = ModelPallas(k_param)

    # Small input consistent with the module: last dim must be 2 (Linear(2, 2)).
    x1 = jax.random.normal(k_x, (2, 8, 2), dtype=jnp.float32)

    y = model(x1)
    y = jax.block_until_ready(y)

    ref = x1 @ model.weight.T + model.bias
    assert y.shape == ref.shape == (2, 8, 2)
    assert jnp.allclose(y, ref, atol=1e-5, rtol=1e-5)

    # Secondary check: exercise the general tiled path (2 M-blocks, 2 K-steps).
    kx2, kw2, kb2 = jax.random.split(jax.random.PRNGKey(1), 3)
    m2, k2, n2 = 512, 1280, 384
    xb = jax.random.normal(kx2, (4, m2 // 4, k2), jnp.float32)
    wb = jax.random.normal(kw2, (n2, k2), jnp.float32) / (k2 ** 0.5)
    bb = jax.random.normal(kb2, (n2,), jnp.float32)
    yb = linear_pallas(xb, wb.T, bb.reshape(1, n2))
    yb = jax.block_until_ready(yb)
    refb = jnp.einsum("bmk,nk->bmn", xb, wb,
                      precision=jax.lax.Precision.HIGHEST) + bb
    assert yb.shape == refb.shape == (4, m2 // 4, n2)
    assert jnp.allclose(yb, refb, atol=5e-2, rtol=5e-2)

    print("KERNEL_OK")
</pallas_src>

<mosaic_0001>
module attributes {stable_mosaic.version = 11 : i64} {
  func.func @_small_linear_kernel(%arg0: memref<16x2xf32, #tpu.memory_space<vmem>>, %arg1: memref<2x2xf32, #tpu.memory_space<vmem>>, %arg2: memref<1x2xf32, #tpu.memory_space<vmem>>, %arg3: memref<16x2xf32, #tpu.memory_space<vmem>>) attributes {dimension_semantics = [], scalar_prefetch = 0 : i64, scratch_operands = 0 : i64, tpu.core_type = #tpu.core_type<tc>} {
    %c0 = arith.constant 0 : index
    %c0_0 = arith.constant 0 : index
    %0 = vector.load %arg0[%c0, %c0_0] : memref<16x2xf32, #tpu.memory_space<vmem>>, vector<16x2xf32>
    %c0_1 = arith.constant 0 : index
    %c0_2 = arith.constant 0 : index
    %1 = vector.load %arg1[%c0_1, %c0_2] : memref<2x2xf32, #tpu.memory_space<vmem>>, vector<2x2xf32>
    %c0_3 = arith.constant 0 : index
    %c0_4 = arith.constant 0 : index
    %2 = vector.load %arg2[%c0_3, %c0_4] : memref<1x2xf32, #tpu.memory_space<vmem>>, vector<1x2xf32>
    %3 = vector.shape_cast %2 : vector<1x2xf32> to vector<1x2xf32>
    %4 = vector.broadcast %3 : vector<1x2xf32> to vector<16x2xf32>
    %5 = vector.extract_strided_slice %0 {offsets = [0, 0], sizes = [16, 1], strides = [1, 1]} : vector<16x2xf32> to vector<16x1xf32>
    %6 = vector.extract_strided_slice %1 {offsets = [0, 0], sizes = [1, 2], strides = [1, 1]} : vector<2x2xf32> to vector<1x2xf32>
    %7 = vector.broadcast %5 : vector<16x1xf32> to vector<16x2xf32>
    %8 = vector.broadcast %6 : vector<1x2xf32> to vector<16x2xf32>
    %9 = arith.mulf %7, %8 : vector<16x2xf32>
    %10 = arith.addf %4, %9 : vector<16x2xf32>
    %11 = vector.extract_strided_slice %0 {offsets = [0, 1], sizes = [16, 1], strides = [1, 1]} : vector<16x2xf32> to vector<16x1xf32>
    %12 = vector.extract_strided_slice %1 {offsets = [1, 0], sizes = [1, 2], strides = [1, 1]} : vector<2x2xf32> to vector<1x2xf32>
    %13 = vector.broadcast %11 : vector<16x1xf32> to vector<16x2xf32>
    %14 = vector.broadcast %12 : vector<1x2xf32> to vector<16x2xf32>
    %15 = arith.mulf %13, %14 : vector<16x2xf32>
    %16 = arith.addf %10, %15 : vector<16x2xf32>
    %c0_5 = arith.constant 0 : index
    %c0_6 = arith.constant 0 : index
    %17 = vector.load %arg3[%c0_5, %c0_6] : memref<16x2xf32, #tpu.memory_space<vmem>>, vector<16x2xf32>
    tpu.vector_store %arg3[%c0_5, %c0_6], %16 {strides = array<i32>} : memref<16x2xf32, #tpu.memory_space<vmem>>, vector<16x2xf32>,
    return
  }
}

</mosaic_0001>

<bundles_post_ra>
// kernel: tpu_custom_call.1
= control target key start
LH: loop header
LB: loop body
LE: loop exit
PB: predicated region body
PF: predicated region fallthrough
CT: control target
= control target key end

     0   :  { %v71_v0 = vmov 1   ;;  %v72_v1 = vmov 0   ;;  %v34_v4 = vlaneseq  ;;  %vm58_vm0 = vcmask 15360   ;;  %s111_s0 = inlined_call_operand.vmem [shape: f32[16,2], index: 0, kind: input, shape index: {}]   ;;  %s112_s1 = inlined_call_operand.vmem [shape: f32[2,2], index: 1, kind: input, shape index: {}]   ;;  %s113_s2 = inlined_call_operand.vmem [shape: f32[1,2], index: 2, kind: input, shape index: {}]   ;;  %s114_s3 = inlined_call_operand.vmem [shape: f32[16,2], index: 3, kind: output, shape index: {}]  }
   0x1   :  { %69 = vset.pattern.permute.xlu1 %v71_v0  ;;  %68 = vset.pattern.permute.xlu0 %v72_v1  ;;  %v14_v2 = vld [vmem:[%s111_s0] sm:$0xff]  ;;  %v15_v3 = vld [vmem:[%s111_s0 + $0x8] sm:$0xff] }
   0x2   :  { %43 = vperm.xlu1 %69, %v14_v2   ;;  %26 = vperm.xlu0 %68, %v14_v2   ;;  %v35_v5 = vshrl.u32 %v34_v4, 7  ;;  %v16_v8 = vld [vmem:[%s112_s1] sm:$0x3] }
   0x3   :  { %v65_v12 = vld [vmem:[%s113_s2] ss:$0 sm:$0xff] }
   0x4   :  { %v52_v6 = vsub.s32 1, %v35_v5  ;;  %v36_v7 = vsub.s32 0, %v35_v5 }
   0x6   :  { %47 = vperm.xlu1 %69, %v15_v3   ;;  %31 = vperm.xlu0 %68, %v15_v3   ;;  %v53_v9 = vrot.slane %v16_v8, %v52_v6  ;;  %v37_v10 = vrot.slane %v16_v8, %v36_v7 }
   0xa   :  { %70 = vset.pattern.permute.xlu0 %v71_v0 }
  0x81   :  { %v44_v11 = vpop.permute.xlu1 %43  ;;  %v27_v13 = vpop.permute.xlu0 %26 }
  0x82   :  { %v54_v14 = vmul.f32 %v53_v9, %v44_v11  ;;  %v38_v15 = vmul.f32 %v37_v10, %v27_v13 }
  0x84   :  { %v40_v16 = vadd.f32 %v65_v12, %v38_v15 }
  0x85   :  { %v48_v17 = vpop.permute.xlu1 %47  ;;  %v32_v18 = vpop.permute.xlu0 %31 }
  0x86   :  { %v56_v19 = vadd.f32 %v54_v14, %v40_v16  ;;  %v39_v20 = vmul.f32 %v37_v10, %v32_v18  ;;  %v55_v21 = vmul.f32 %v53_v9, %v48_v17 }
  0x88   :  { %59 = vst.msk [vmem:[%s114_s3] sm:$0xff] %vm58_vm0, %v56_v19  ;;  %v41_v22 = vadd.f32 %v65_v12, %v39_v20 }
  0x8a   :  { %v57_v23 = vadd.f32 %v55_v21, %v41_v22 }
  0x8c   :  { %60 = vst.msk [vmem:[%s114_s3 + $0x8] sm:$0xff] %vm58_vm0, %v57_v23 }

</bundles_post_ra>
